<compile_context>
chip_gen: v6e
topology: v6e:2x2x1
jax: 0.10.0
libtpu: 0.0.40
codegen_flags: <defaults>
</compile_context>

<pallas_src>
import functools
import math

import jax
import jax.numpy as jnp
from jax.experimental import pallas as pl
from jax.experimental.pallas import tpu as pltpu


def _flash_attn_kernel(xq_ref, xkv_ref, wq_ref, wkv_ref, bq_ref, bkv_ref, o_ref,
                       q_sc, acc_sc, m_sc, l_sc, *, q_tile, kv_tile, head_size):
    # Grid: (batch, q_row_block, kv_block); kv is the innermost (reduction) axis.
    qi = pl.program_id(1)
    ki = pl.program_id(2)
    n_kv = pl.num_programs(2)

    q_start = qi * q_tile
    kv_start = ki * kv_tile

    @pl.when(ki == 0)
    def _init():
        # Project q once per (batch, q block). Scale 1/sqrt(C) is already folded
        # into wq/bq by the wrapper.
        xq = xq_ref[0].astype(jnp.bfloat16)                                 # (q_tile, C)
        q = jnp.dot(xq, wq_ref[...], preferred_element_type=jnp.float32) + bq_ref[...]
        q_sc[...] = q.astype(jnp.bfloat16)
        acc_sc[...] = jnp.zeros_like(acc_sc)
        m_sc[...] = jnp.full_like(m_sc, -jnp.inf)
        l_sc[...] = jnp.zeros_like(l_sc)

    # Causal skip: this kv tile is entirely above the diagonal for every q row.
    @pl.when(kv_start <= q_start + (q_tile - 1))
    def _compute():
        # Fused K|V projection of this kv tile (one MXU pass, f32 accumulation).
        xkv = xkv_ref[0].astype(jnp.bfloat16)                               # (kv_tile, C)
        kv = jnp.dot(xkv, wkv_ref[...], preferred_element_type=jnp.float32) + bkv_ref[...]
        k = kv[:, :head_size].astype(jnp.bfloat16)
        v = kv[:, head_size:].astype(jnp.bfloat16)

        # scores = q @ k^T via contraction dims (no explicit transpose). (q_tile, kv_tile)
        s = jax.lax.dot_general(q_sc[...], k, (((1,), (1,)), ((), ())),
                                preferred_element_type=jnp.float32)

        # Causal mask from grid-scalar offsets + one iota compare (no int division).
        rows = jax.lax.broadcasted_iota(jnp.int32, (q_tile, kv_tile), 0) + q_start
        cols = jax.lax.broadcasted_iota(jnp.int32, (q_tile, kv_tile), 1) + kv_start
        s = jnp.where(rows >= cols, s, -jnp.inf)

        # Online softmax update. kv block 0 always contains the diagonal column 0,
        # so every row has at least one finite score before any rescale (no NaNs).
        m_prev = m_sc[...]
        m_new = jnp.maximum(m_prev, jnp.max(s, axis=-1, keepdims=True))
        alpha = jnp.exp(m_prev - m_new)
        p = jnp.exp(s - m_new)
        l_sc[...] = alpha * l_sc[...] + jnp.sum(p, axis=-1, keepdims=True)
        acc_sc[...] = alpha * acc_sc[...] + jnp.dot(
            p.astype(jnp.bfloat16), v, preferred_element_type=jnp.float32)
        m_sc[...] = m_new

    @pl.when(ki == n_kv - 1)
    def _finalize():
        inv = pl.reciprocal(l_sc[...], approx=True)                         # EUP slot
        o_ref[0] = (acc_sc[...] * inv).astype(o_ref.dtype)


def single_head_attention(x, wq, wk, wv, bq, bk, bv, *,
                          q_tile_max=256, kv_tile_max=512):
    """Forward of SingleHeadAttention (eval mode) as a flash-style Pallas kernel."""
    B, T, C = x.shape
    H = wq.shape[1]

    # Flash tile sizes (re-derive for v7x's 64 MiB VMEM: q_tile x kv_tile f32 scores
    # stay around 0.5 MiB with these defaults). Small T -> whole sequence in one tile.
    q_tile = T if T <= q_tile_max else q_tile_max
    kv_tile = T if T <= kv_tile_max else kv_tile_max
    assert T % q_tile == 0 and T % kv_tile == 0, "seq_len must tile evenly"

    # Fold the 1/sqrt(n_embd) score scale into the query projection (done once,
    # on a tiny (C,H) weight). bf16 MXU operands, f32 bias.
    inv_sqrt_c = 1.0 / math.sqrt(C)
    wq_s = (wq * inv_sqrt_c).astype(jnp.bfloat16)                # (C, H)
    bq_s = (bq * inv_sqrt_c).astype(jnp.float32).reshape(1, H)   # (1, H)
    wkv = jnp.concatenate([wk, wv], axis=1).astype(jnp.bfloat16)            # (C, 2H)
    bkv = jnp.concatenate([bk, bv], axis=1).astype(jnp.float32).reshape(1, 2 * H)

    grid = (B, T // q_tile, T // kv_tile)
    kernel = functools.partial(_flash_attn_kernel,
                               q_tile=q_tile, kv_tile=kv_tile, head_size=H)

    out = pl.pallas_call(
        kernel,
        out_shape=jax.ShapeDtypeStruct((B, T, H), x.dtype),
        grid_spec=pltpu.PrefetchScalarGridSpec(
            num_scalar_prefetch=0,
            grid=grid,
            in_specs=[
                # x streamed twice: q-row tiles and kv tiles (f32; cast in-kernel).
                pl.BlockSpec((1, q_tile, C), lambda b, qi, ki: (b, qi, 0)),
                pl.BlockSpec((1, kv_tile, C), lambda b, qi, ki: (b, ki, 0)),
                # Weights/biases: constant index_map -> VMEM-resident, no re-DMA.
                pl.BlockSpec((C, H), lambda b, qi, ki: (0, 0)),
                pl.BlockSpec((C, 2 * H), lambda b, qi, ki: (0, 0)),
                pl.BlockSpec((1, H), lambda b, qi, ki: (0, 0)),
                pl.BlockSpec((1, 2 * H), lambda b, qi, ki: (0, 0)),
            ],
            # Output block constant across the kv axis (accumulator pattern).
            out_specs=pl.BlockSpec((1, q_tile, H), lambda b, qi, ki: (b, qi, 0)),
            scratch_shapes=[
                pltpu.VMEM((q_tile, H), jnp.bfloat16),   # cached scaled q (bf16)
                pltpu.VMEM((q_tile, H), jnp.float32),    # acc
                pltpu.VMEM((q_tile, 1), jnp.float32),    # running max m
                pltpu.VMEM((q_tile, 1), jnp.float32),    # running sum l
            ],
        ),
        compiler_params=pltpu.CompilerParams(
            dimension_semantics=("parallel", "parallel", "arbitrary"),
            vmem_limit_bytes=32 * 1024 * 1024,
        ),
    )(x, x, wq_s, wkv, bq_s, bkv)
    return out


def reference(x, wq, wk, wv, bq, bk, bv):
    # Pure-JAX f32 reference mirroring the PyTorch forward (dropout in eval mode).
    B, T, C = x.shape
    q = x @ wq + bq
    k = x @ wk + bk
    v = x @ wv + bv
    w = jnp.einsum("btd,bsd->bts", q, k)
    mask = jnp.tril(jnp.ones((T, T)))
    w = jnp.where(mask == 0, -jnp.inf, w) / math.sqrt(C)
    w = jax.nn.softmax(w, axis=-1)
    return w @ v


if __name__ == "__main__":
    # config: n_embd=32, head_size=16, block_size=8, dropout=0.0 (eval)
    B, T, C, H = 2, 8, 32, 16

    key = jax.random.PRNGKey(0)
    kx, kq, kk, kv, kbq, kbk, kbv = jax.random.split(key, 7)

    x = jax.random.normal(kx, (B, T, C), dtype=jnp.float32)

    # Deterministic PyTorch-Linear-style init: U(-1/sqrt(fan_in), 1/sqrt(fan_in))
    bound = 1.0 / math.sqrt(C)
    wq = jax.random.uniform(kq, (C, H), jnp.float32, -bound, bound)
    wk = jax.random.uniform(kk, (C, H), jnp.float32, -bound, bound)
    wv = jax.random.uniform(kv, (C, H), jnp.float32, -bound, bound)
    bq = jax.random.uniform(kbq, (1, H), jnp.float32, -bound, bound)
    bk = jax.random.uniform(kbk, (1, H), jnp.float32, -bound, bound)
    bv = jax.random.uniform(kbv, (1, H), jnp.float32, -bound, bound)

    out = single_head_attention(x, wq, wk, wv, bq, bk, bv)
    out = jax.block_until_ready(out)

    ref = reference(x, wq, wk, wv, bq, bk, bv)
    assert out.shape == (B, T, H)
    # bf16 MXU operands + approx reciprocal => relaxed (but still tight) tolerance.
    assert jnp.allclose(out, ref, atol=2e-2, rtol=2e-2), "mismatch vs reference"

    print("KERNEL_OK")
</pallas_src>

<mosaic_0001>
module attributes {stable_mosaic.version = 11 : i64} {
  func.func @_flash_attn_kernel(%arg0: i32, %arg1: i32, %arg2: i32, %arg3: memref<1x8x32xf32, #tpu.memory_space<vmem>>, %arg4: memref<1x8x32xf32, #tpu.memory_space<vmem>>, %arg5: memref<32x16xbf16, #tpu.memory_space<vmem>>, %arg6: memref<32x32xbf16, #tpu.memory_space<vmem>>, %arg7: memref<1x16xf32, #tpu.memory_space<vmem>>, %arg8: memref<1x32xf32, #tpu.memory_space<vmem>>, %arg9: memref<1x8x16xf32, #tpu.memory_space<vmem>>, %arg10: memref<8x16xbf16, #tpu.memory_space<vmem>>, %arg11: memref<8x16xf32, #tpu.memory_space<vmem>>, %arg12: memref<8x1xf32, #tpu.memory_space<vmem>>, %arg13: memref<8x1xf32, #tpu.memory_space<vmem>>) attributes {dimension_semantics = [#tpu.dimension_semantics<parallel>, #tpu.dimension_semantics<parallel>, #tpu.dimension_semantics<arbitrary>], iteration_bounds = array<i64: 2, 1, 1>, scalar_prefetch = 0 : i64, scratch_operands = 4 : i64, tpu.core_type = #tpu.core_type<tc>, window_params = [{transform_indices = @transform_0, window_bounds = array<i64: 1, 8, 32>}, {transform_indices = @transform_1, window_bounds = array<i64: 1, 8, 32>}, {pipeline_mode = #tpu.pipeline_mode<synchronous>, transform_indices = @transform_2, window_bounds = array<i64: 32, 16>}, {pipeline_mode = #tpu.pipeline_mode<synchronous>, transform_indices = @transform_3, window_bounds = array<i64: 32, 32>}, {pipeline_mode = #tpu.pipeline_mode<synchronous>, transform_indices = @transform_4, window_bounds = array<i64: 1, 16>}, {pipeline_mode = #tpu.pipeline_mode<synchronous>, transform_indices = @transform_5, window_bounds = array<i64: 1, 32>}, {transform_indices = @transform_6, window_bounds = array<i64: 1, 8, 16>}]} {
    %c8_i32 = arith.constant 8 : i32
    %0 = arith.muli %arg1, %c8_i32 : i32
    %c8_i32_0 = arith.constant 8 : i32
    %1 = arith.muli %arg2, %c8_i32_0 : i32
    %c0_i32 = arith.constant 0 : i32
    %2 = arith.cmpi eq, %arg2, %c0_i32 : i32
    %3 = arith.extui %2 : i1 to i32
    %c0_i32_1 = arith.constant 0 : i32
    %4 = arith.cmpi ne, %3, %c0_i32_1 : i32
    scf.if %4 {
      %c0 = arith.constant 0 : index
      %c0_5 = arith.constant 0 : index
      %c0_6 = arith.constant 0 : index
      %12 = vector.load %arg3[%c0, %c0_5, %c0_6] : memref<1x8x32xf32, #tpu.memory_space<vmem>>, vector<1x8x32xf32>
      %13 = vector.shape_cast %12 : vector<1x8x32xf32> to vector<8x32xf32>
      %14 = arith.truncf %13 : vector<8x32xf32> to vector<8x32xbf16>
      %c0_7 = arith.constant 0 : index
      %c0_8 = arith.constant 0 : index
      %15 = vector.load %arg5[%c0_7, %c0_8] : memref<32x16xbf16, #tpu.memory_space<vmem>>, vector<32x16xbf16>
      %cst = arith.constant dense<0.000000e+00> : vector<8x16xf32>
      %16 = tpu.matmul %14, %15, %cst {dimension_numbers = #tpu.dot_dimension_numbers<[1], [0], [0], [1], [0, 0, 1, 1], [], []>} : vector<8x32xbf16>, vector<32x16xbf16>, vector<8x16xf32> -> vector<8x16xf32>
      %c0_9 = arith.constant 0 : index
      %c0_10 = arith.constant 0 : index
      %17 = vector.load %arg7[%c0_9, %c0_10] : memref<1x16xf32, #tpu.memory_space<vmem>>, vector<1x16xf32>
      %18 = vector.broadcast %17 : vector<1x16xf32> to vector<8x16xf32>
      %19 = arith.addf %16, %18 : vector<8x16xf32>
      %20 = arith.truncf %19 : vector<8x16xf32> to vector<8x16xbf16>
      %c0_11 = arith.constant 0 : index
      %c0_12 = arith.constant 0 : index
      %21 = vector.load %arg10[%c0_11, %c0_12] : memref<8x16xbf16, #tpu.memory_space<vmem>>, vector<8x16xbf16>
      tpu.vector_store %arg10[%c0_11, %c0_12], %20 {strides = array<i32>} : memref<8x16xbf16, #tpu.memory_space<vmem>>, vector<8x16xbf16>,
      %cst_13 = arith.constant 0.000000e+00 : f32
      %22 = vector.broadcast %cst_13 : f32 to vector<8x16xf32>
      %c0_14 = arith.constant 0 : index
      %c0_15 = arith.constant 0 : index
      %23 = vector.load %arg11[%c0_14, %c0_15] : memref<8x16xf32, #tpu.memory_space<vmem>>, vector<8x16xf32>
      tpu.vector_store %arg11[%c0_14, %c0_15], %22 {strides = array<i32>} : memref<8x16xf32, #tpu.memory_space<vmem>>, vector<8x16xf32>,
      %cst_16 = arith.constant 0xFF800000 : f32
      %24 = vector.broadcast %cst_16 : f32 to vector<8x1xf32>
      %c0_17 = arith.constant 0 : index
      %c0_18 = arith.constant 0 : index
      %25 = vector.load %arg12[%c0_17, %c0_18] : memref<8x1xf32, #tpu.memory_space<vmem>>, vector<8x1xf32>
      tpu.vector_store %arg12[%c0_17, %c0_18], %24 {strides = array<i32>} : memref<8x1xf32, #tpu.memory_space<vmem>>, vector<8x1xf32>,
      %cst_19 = arith.constant 0.000000e+00 : f32
      %26 = vector.broadcast %cst_19 : f32 to vector<8x1xf32>
      %c0_20 = arith.constant 0 : index
      %c0_21 = arith.constant 0 : index
      %27 = vector.load %arg13[%c0_20, %c0_21] : memref<8x1xf32, #tpu.memory_space<vmem>>, vector<8x1xf32>
      tpu.vector_store %arg13[%c0_20, %c0_21], %26 {strides = array<i32>} : memref<8x1xf32, #tpu.memory_space<vmem>>, vector<8x1xf32>,
    } else {
    }
    %c7_i32 = arith.constant 7 : i32
    %5 = arith.addi %0, %c7_i32 : i32
    %6 = arith.cmpi sle, %1, %5 : i32
    %7 = arith.extui %6 : i1 to i32
    %c0_i32_2 = arith.constant 0 : i32
    %8 = arith.cmpi ne, %7, %c0_i32_2 : i32
    scf.if %8 {
      %c0 = arith.constant 0 : index
      %c0_5 = arith.constant 0 : index
      %c0_6 = arith.constant 0 : index
      %12 = vector.load %arg4[%c0, %c0_5, %c0_6] : memref<1x8x32xf32, #tpu.memory_space<vmem>>, vector<1x8x32xf32>
      %13 = vector.shape_cast %12 : vector<1x8x32xf32> to vector<8x32xf32>
      %14 = arith.truncf %13 : vector<8x32xf32> to vector<8x32xbf16>
      %c0_7 = arith.constant 0 : index
      %c0_8 = arith.constant 0 : index
      %15 = vector.load %arg6[%c0_7, %c0_8] : memref<32x32xbf16, #tpu.memory_space<vmem>>, vector<32x32xbf16>
      %cst = arith.constant dense<0.000000e+00> : vector<8x32xf32>
      %16 = tpu.matmul %14, %15, %cst {dimension_numbers = #tpu.dot_dimension_numbers<[1], [0], [0], [1], [0, 0, 1, 1], [], []>} : vector<8x32xbf16>, vector<32x32xbf16>, vector<8x32xf32> -> vector<8x32xf32>
      %c0_9 = arith.constant 0 : index
      %c0_10 = arith.constant 0 : index
      %17 = vector.load %arg8[%c0_9, %c0_10] : memref<1x32xf32, #tpu.memory_space<vmem>>, vector<1x32xf32>
      %18 = vector.broadcast %17 : vector<1x32xf32> to vector<8x32xf32>
      %19 = arith.addf %16, %18 : vector<8x32xf32>
      %20 = vector.extract_strided_slice %19 {offsets = [0, 0], sizes = [8, 16], strides = [1, 1]} : vector<8x32xf32> to vector<8x16xf32>
      %21 = arith.truncf %20 : vector<8x16xf32> to vector<8x16xbf16>
      %22 = vector.extract_strided_slice %19 {offsets = [0, 16], sizes = [8, 16], strides = [1, 1]} : vector<8x32xf32> to vector<8x16xf32>
      %23 = arith.truncf %22 : vector<8x16xf32> to vector<8x16xbf16>
      %c0_11 = arith.constant 0 : index
      %c0_12 = arith.constant 0 : index
      %24 = vector.load %arg10[%c0_11, %c0_12] : memref<8x16xbf16, #tpu.memory_space<vmem>>, vector<8x16xbf16>
      %cst_13 = arith.constant dense<0.000000e+00> : vector<8x8xf32>
      %25 = tpu.matmul %24, %21, %cst_13 {dimension_numbers = #tpu.dot_dimension_numbers<[1], [1], [0], [0], [0, 0, 1, 0], [], []>} : vector<8x16xbf16>, vector<8x16xbf16>, vector<8x8xf32> -> vector<8x8xf32>
      %26 = tpu.iota {dimensions = array<i32: 0>} : vector<8x8xi32>
      %27 = vector.broadcast %0 : i32 to vector<8x8xi32>
      %28 = arith.addi %26, %27 : vector<8x8xi32>
      %29 = tpu.iota {dimensions = array<i32: 1>} : vector<8x8xi32>
      %30 = vector.broadcast %1 : i32 to vector<8x8xi32>
      %31 = arith.addi %29, %30 : vector<8x8xi32>
      %32 = arith.cmpi sge, %28, %31 : vector<8x8xi32>
      %cst_14 = arith.constant 0xFF800000 : f32
      %33 = vector.broadcast %cst_14 : f32 to vector<8x8xf32>
      %34 = arith.select %32, %25, %33 : vector<8x8xi1>, vector<8x8xf32>
      %c0_15 = arith.constant 0 : index
      %c0_16 = arith.constant 0 : index
      %35 = vector.load %arg12[%c0_15, %c0_16] : memref<8x1xf32, #tpu.memory_space<vmem>>, vector<8x1xf32>
      %cst_17 = arith.constant dense<0xFF800000> : vector<8xf32>
      %36 = vector.multi_reduction <maximumf>, %34, %cst_17 [1] : vector<8x8xf32> to vector<8xf32>
      %37 = vector.shape_cast %36 : vector<8xf32> to vector<8x1xf32>
      %38 = arith.maximumf %35, %37 : vector<8x1xf32>
      %39 = arith.subf %35, %38 : vector<8x1xf32>
      %40 = math.exp %39 : vector<8x1xf32>
      %41 = vector.broadcast %38 : vector<8x1xf32> to vector<8x8xf32>
      %42 = arith.subf %34, %41 : vector<8x8xf32>
      %43 = math.exp %42 : vector<8x8xf32>
      %c0_18 = arith.constant 0 : index
      %c0_19 = arith.constant 0 : index
      %44 = vector.load %arg13[%c0_18, %c0_19] : memref<8x1xf32, #tpu.memory_space<vmem>>, vector<8x1xf32>
      %45 = arith.mulf %40, %44 : vector<8x1xf32>
      %cst_20 = arith.constant dense<0.000000e+00> : vector<8xf32>
      %46 = vector.multi_reduction <add>, %43, %cst_20 [1] : vector<8x8xf32> to vector<8xf32>
      %47 = vector.shape_cast %46 : vector<8xf32> to vector<8x1xf32>
      %48 = arith.addf %45, %47 : vector<8x1xf32>
      %c0_21 = arith.constant 0 : index
      %c0_22 = arith.constant 0 : index
      %49 = vector.load %arg13[%c0_21, %c0_22] : memref<8x1xf32, #tpu.memory_space<vmem>>, vector<8x1xf32>
      tpu.vector_store %arg13[%c0_21, %c0_22], %48 {strides = array<i32>} : memref<8x1xf32, #tpu.memory_space<vmem>>, vector<8x1xf32>,
      %c0_23 = arith.constant 0 : index
      %c0_24 = arith.constant 0 : index
      %50 = vector.load %arg11[%c0_23, %c0_24] : memref<8x16xf32, #tpu.memory_space<vmem>>, vector<8x16xf32>
      %51 = vector.broadcast %40 : vector<8x1xf32> to vector<8x16xf32>
      %52 = arith.mulf %51, %50 : vector<8x16xf32>
      %53 = arith.truncf %43 : vector<8x8xf32> to vector<8x8xbf16>
      %cst_25 = arith.constant dense<0.000000e+00> : vector<8x16xf32>
      %54 = tpu.matmul %53, %23, %cst_25 {dimension_numbers = #tpu.dot_dimension_numbers<[1], [0], [0], [1], [0, 0, 1, 1], [], []>} : vector<8x8xbf16>, vector<8x16xbf16>, vector<8x16xf32> -> vector<8x16xf32>
      %55 = arith.addf %52, %54 : vector<8x16xf32>
      %c0_26 = arith.constant 0 : index
      %c0_27 = arith.constant 0 : index
      %56 = vector.load %arg11[%c0_26, %c0_27] : memref<8x16xf32, #tpu.memory_space<vmem>>, vector<8x16xf32>
      tpu.vector_store %arg11[%c0_26, %c0_27], %55 {strides = array<i32>} : memref<8x16xf32, #tpu.memory_space<vmem>>, vector<8x16xf32>,
      %c0_28 = arith.constant 0 : index
      %c0_29 = arith.constant 0 : index
      %57 = vector.load %arg12[%c0_28, %c0_29] : memref<8x1xf32, #tpu.memory_space<vmem>>, vector<8x1xf32>
      tpu.vector_store %arg12[%c0_28, %c0_29], %38 {strides = array<i32>} : memref<8x1xf32, #tpu.memory_space<vmem>>, vector<8x1xf32>,
    } else {
    }
    %c0_i32_3 = arith.constant 0 : i32
    %9 = arith.cmpi eq, %arg2, %c0_i32_3 : i32
    %10 = arith.extui %9 : i1 to i32
    %c0_i32_4 = arith.constant 0 : i32
    %11 = arith.cmpi ne, %10, %c0_i32_4 : i32
    scf.if %11 {
      %c0 = arith.constant 0 : index
      %c0_5 = arith.constant 0 : index
      %12 = vector.load %arg13[%c0, %c0_5] : memref<8x1xf32, #tpu.memory_space<vmem>>, vector<8x1xf32>
      %13 = tpu.reciprocal %12 {approx = true} : vector<8x1xf32> -> vector<8x1xf32>
      %c0_6 = arith.constant 0 : index
      %c0_7 = arith.constant 0 : index
      %14 = vector.load %arg11[%c0_6, %c0_7] : memref<8x16xf32, #tpu.memory_space<vmem>>, vector<8x16xf32>
      %15 = vector.broadcast %13 : vector<8x1xf32> to vector<8x16xf32>
      %16 = arith.mulf %14, %15 : vector<8x16xf32>
      %c0_8 = arith.constant 0 : index
      %c0_9 = arith.constant 0 : index
      %c0_10 = arith.constant 0 : index
      %17 = vector.load %arg9[%c0_8, %c0_9, %c0_10] : memref<1x8x16xf32, #tpu.memory_space<vmem>>, vector<1x8x16xf32>
      %18 = vector.shape_cast %17 : vector<1x8x16xf32> to vector<8x16xf32>
      %19 = vector.shape_cast %16 : vector<8x16xf32> to vector<1x8x16xf32>
      tpu.vector_store %arg9[%c0_8, %c0_9, %c0_10], %19 {strides = array<i32>} : memref<1x8x16xf32, #tpu.memory_space<vmem>>, vector<1x8x16xf32>,
    } else {
    }
    return
  }
  func.func @transform_0(%arg0: i32, %arg1: i32, %arg2: i32) -> (i32, i32, i32) {
    %c0_i32 = arith.constant 0 : i32
    %c0_i32_0 = arith.constant 0 : i32
    return %arg0, %arg1, %c0_i32 : i32, i32, i32
  }
  func.func @transform_1(%arg0: i32, %arg1: i32, %arg2: i32) -> (i32, i32, i32) {
    %c0_i32 = arith.constant 0 : i32
    %c0_i32_0 = arith.constant 0 : i32
    return %arg0, %arg2, %c0_i32 : i32, i32, i32
  }
  func.func @transform_2(%arg0: i32, %arg1: i32, %arg2: i32) -> (i32, i32) {
    %c0_i32 = arith.constant 0 : i32
    %c0_i32_0 = arith.constant 0 : i32
    %c0_i32_1 = arith.constant 0 : i32
    return %c0_i32, %c0_i32_0 : i32, i32
  }
  func.func @transform_3(%arg0: i32, %arg1: i32, %arg2: i32) -> (i32, i32) {
    %c0_i32 = arith.constant 0 : i32
    %c0_i32_0 = arith.constant 0 : i32
    %c0_i32_1 = arith.constant 0 : i32
    return %c0_i32, %c0_i32_0 : i32, i32
  }
  func.func @transform_4(%arg0: i32, %arg1: i32, %arg2: i32) -> (i32, i32) {
    %c0_i32 = arith.constant 0 : i32
    %c0_i32_0 = arith.constant 0 : i32
    %c0_i32_1 = arith.constant 0 : i32
    return %c0_i32, %c0_i32_0 : i32, i32
  }
  func.func @transform_5(%arg0: i32, %arg1: i32, %arg2: i32) -> (i32, i32) {
    %c0_i32 = arith.constant 0 : i32
    %c0_i32_0 = arith.constant 0 : i32
    %c0_i32_1 = arith.constant 0 : i32
    return %c0_i32, %c0_i32_0 : i32, i32
  }
  func.func @transform_6(%arg0: i32, %arg1: i32, %arg2: i32) -> (i32, i32, i32) {
    %c0_i32 = arith.constant 0 : i32
    %c0_i32_0 = arith.constant 0 : i32
    return %arg0, %arg1, %c0_i32 : i32, i32, i32
  }
}

</mosaic_0001>

<bundles_post_ra>
// kernel: tpu_custom_call.1
= control target key start
LH: loop header
LB: loop body
LE: loop exit
PB: predicated region body
PF: predicated region fallthrough
CT: control target
= control target key end

     0   :  { %s1319_s0 = inlined_call_operand.vmem [shape: f32[2,8,32], index: 0, kind: input, shape index: {}]   ;;  %s1320_s1 = inlined_call_operand.hbm [shape: f32[2,8,32], index: 1, kind: input, shape index: {}]   ;;  %s1321_s2 = inlined_call_operand.vmem [shape: bf16[32,16], index: 2, kind: input, shape index: {}]   ;;  %s1322_s3 = inlined_call_operand.hbm [shape: bf16[32,32], index: 3, kind: input, shape index: {}]   ;;  %s1323_s4 = inlined_call_operand.vmem [shape: f32[1,16], index: 4, kind: input, shape index: {}]   ;;  %s1324_s5 = inlined_call_operand.vmem [shape: f32[1,32], index: 5, kind: input, shape index: {}]   ;;  %s1325_s6 = inlined_call_operand.hbm [shape: f32[2,8,16], index: 6, kind: output, shape index: {}]  }
   0x1   :  { %1329 = sst [smem:[#allocation17_spill]] %s1322_s3 }
   0x2   :  { %11 = vsyncpa [#allocation7], 0 }
   0x3   :  { %13 = vsyncpa [#allocation7 + $0x1], 0 }
   0x4   :  { %14 = vsyncpa [#allocation10], 0 }
   0x5   :  { %15 = vsyncpa [#allocation8], 0 }
   0x6   :  { %17 = vsyncpa [#allocation8 + $0x1], 0  ;;  %s1115_s21 = smov 0   ;;  %s1117_s22 = smov 0  }
   0x7   :  { %s1119_s23 = smov 0   ;;  %s1121_s24 = smov 0  }
   0x8   :  { %s1123_s25 = smov 0   ;;  %s1125_s26 = smov 0  }
   0x9 LB: > { %1330 = sst [smem:[#allocation15_spill]] %s1064_s25  ;;  %s774_s27 = sadd.s32 4294967295, %s1068_s26   ;;  %s1068_s26 = sphi %s1125_s26, %s23_s26   ;;  %s1064_s25 = sphi %s1123_s25, %s1346_s25   ;;  %s1060_s24 = sphi %s1121_s24, %s1345_s24   ;;  %s1056_s23 = sphi %s1119_s23, %s1349_s23   ;;  %s1052_s22 = sphi %s1117_s22, %s1348_s22   ;;  %s1048_s21 = sphi %s1115_s21, %s1347_s21  }
   0xa   : > { %s775_s28 = sadd.s32 4294967294, %s1068_s26   ;;  %p92_p0 = scmp.ne.s32.totalorder %s1052_s22, %s1048_s21 }
   0xb   : > { %p1149_p1 = scmp.eq.s32.totalorder %s774_s27, 0  ;;  %p1153_p2 = scmp.eq.s32.totalorder %s774_s27, 1 }
   0xc   : > { %p208_p3 = scmp.eq.s32.totalorder %s775_s28, 1  ;;  %p776_p5 = scmp.ge.s32.totalorder %s1068_s26, 1 }
   0xd   : > { %p1159_p4 = por %p1149_p1, %p92_p0  ;;  %p215_p7 = scmp.lt.s32.totalorder %s1068_s26, 3 }
   0xe   : > { %p1164_p6 = por %p208_p3, %p92_p0  ;;  %s1070_s10 = smov [#allocation9]  }
   0xf   : > { %s1333_s7 = scalar_select %p1159_p4, 1, 0 }
  0x10   : > { %s1334_s8 = scalar_select %p1164_p6, 1, 0 }
  0x11   : > { %p1169_p8 = pnand %p776_p5, %p215_p7  ;;  %s230_s11 = sshll.u32 %s1070_s10, 4  ;;  %s231_s11 = int_to_ptr.vmem [resolvable:$true] %s230_s11 }
  0x12   : > { %s42_s13 = sadd.s32 1, %s1064_s25  ;;  %s941_s14 = scalar_lea.vmem %s231_s11, 256 }
  0x13   : > { %p846_p9 = pneg %p1169_p8  ;;  %p942_p13 = scmp.ne.s32.totalorder %s231_s11, %s941_s14 }
  0x14   : > { %p949_p5 = scmp.lt.s32.totalorder %s231_s11, %s231_s11  ;;  %p950_p7 = scmp.lt.s32.totalorder %s941_s14, %s941_s14 }
  0x15   : > { %p1178_p11 = pnand %p846_p9, %p1149_p1 }
  0x16   : > { %p951_p6 = por %p950_p7, %p949_p5 }
  0x17   : > { %p932_p12 = pneg %p1178_p11 }
  0x19   : > { %p944_p0 = pnand %p942_p13, %p932_p12 }
  0x1b   : > { %p945_p3 = pneg %p944_p0 }
  0x1d   : > { %p952_p4 = pnand %p951_p6, %p945_p3 }
  0x1f   : > { %955 = shalt.err (!%p952_p4)
}
  0x20   : > { %s1071_s15 = smov 64   ;;  %s1072_s16 = smov 4  }
  0x21   : > { %s1337_s3 = sld [smem:[#allocation17_spill]]  ;;  %p44_p6 = scmp.ge.s32.totalorder %s42_s13, 2 }
  0x22   : > { %s79_s19 = sadd.s32 1, %s1056_s23  ;;  %p86_p4 = scmp.ne.s32.totalorder %s1056_s23, %s1052_s22 }
  0x23   : > { %p87_p9 = scmp.eq.s32.totalorder %s1068_s26, 0  ;;  %s1351_s13 = smov (%p44_p6, %s42_s13), 0 }
  0x24   : > { %1338 = sst [smem:[#allocation16_spill]] %s1351_s13  ;;  %p1202_p13 = por %p1153_p2, %p86_p4 }
  0x25   : > { %p1196_p12 = por %p87_p9, %p86_p4  ;;  %s74_s28 = ssub.s32 %s1064_s25, %s1351_s13 }
  0x26   : > { %p859_p0 = scmp.lt.s32.totalorder %s1068_s26, 2  ;;  %s260_s10 = sand.u32 1, %s1056_s23  }
  0x27   : > { %849 = dma.hbm_to_vmem [thread:$0]  (!%p1178_p11), %s1337_s3, 256, %s231_s11, [#allocation10], %s1071_s15, %s1071_s15, %s1072_s16  }
  0x28   : > { %p77_p11 = scmp.eq.s32.totalorder %s74_s28, 0  ;;  %s779_s11 = sshll.u32 %s260_s10, 3 }
  0x29   : > { %s780_s14 = sshll.u32 %s1064_s25, 7  ;;  %s264_s18 = scalar_lea.vmem [#allocation6], %s779_s11 }
  0x2a   : > { %s1211_s12 = scalar_select %p77_p11, %s1056_s23, %s79_s19  }
  0x2b   : > { %s270_s17 = scalar_lea.hbm %s1320_s1, %s780_s14  ;;  %s272_s3 = sshll.u32 %s264_s18, 4  ;;  %s273_s3 = int_to_ptr.vmem [resolvable:$true] %s272_s3 }
  0x2c   : > { %p1219_p2 = pnand %p859_p0, %p1196_p12  ;;  %s261_s13 = scalar_lea.sflag [#allocation7], %s260_s10 }
  0x2d   : > { %s969_s28 = scalar_lea.vmem %s273_s3, 128  ;;  %s1073_s19 = smov [#allocation6]  }
  0x2e   : > { %p958_p3 = pneg %p1219_p2  ;;  %p970_p5 = scmp.ne.s32.totalorder %s273_s3, %s969_s28 }
  0x2f   : > { %s974_s25 = sshll.u32 %s1073_s19, 4  ;;  %s975_s25 = int_to_ptr.vmem [resolvable:$false] %s974_s25 }
  0x30   : > { %p972_p7 = pnand %p970_p5, %p958_p3  ;;  %s976_s14 = scalar_lea.vmem %s975_s25, 256 }
  0x31   : > { %p977_p4 = scmp.lt.s32.totalorder %s273_s3, %s975_s25  ;;  %p978_p9 = scmp.lt.s32.totalorder %s976_s14, %s969_s28 }
  0x32   : > { %p973_p6 = pneg %p972_p7 }
  0x33   : > { %p979_p11 = por %p978_p9, %p977_p4 }
  0x35   : > { %p980_p10 = pnand %p979_p11, %p973_p6 }
  0x37   : > { %983 = shalt.err (!%p980_p10)
}
  0x38   : > { %853 = dma.hbm_to_vmem [thread:$0]  (!%p1219_p2), %s270_s17, 128, %s273_s3, %s261_s13  }
  0x39   : > { %281 = sbr.rel (%p1169_p8) target bundleno = 1059 (0x423), region = 44  ;;  %s1230_s20 = sand.u32 (!%p1169_p8), 1, %s1052_s22  }
  0x3a   : > { %s782_s10 = sshll.u32 (!%p1169_p8), %s1230_s20, 3  ;;  %s284_s11 = scalar_lea.sflag (!%p1169_p8), [#allocation7], %s1230_s20 }
  0x3b   : > { %s287_s25 = scalar_lea.vmem (!%p1169_p8), [#allocation6], %s782_s10  ;;  %p1342_p12 = scmp.ne.s32.totalorder (!%p1169_p8), %s1333_s7, 0 }
  0x3e   : > { %1035 = dma.done.wait (%p1342_p12), %s284_s11, 128  }
  0x3f   : > { %1037 = vsyncadd (%p1342_p12), %s284_s11, 4294967168 }
  0x40   : > { %1039 = dma.done.wait (%p1149_p1), [#allocation10], 256  }
  0x41   : > { %1041 = vsyncadd (%p1149_p1), [#allocation10], 4294967040  ;;  %p327_p8 = scmp.lt.s32.totalorder %s1060_s24, 1  ;;  %v1074_v0 = vmov 0.0   ;;  %vm1075_vm0 = vmmov 0   ;;  %v920_v1 = vld [vmem:[%s1321_s2 + $0x8] sm:$0xff]   ;;  %v541_v28 = vlaneseq }
  0x42   : > { %810 = vmatprep.subr.bf16.mxu0 %v1074_v0  ;;  %818 = vmatprep.subr.bf16.mxu1 %v1074_v0  ;;  %v921_v2 = vld [vmem:[#allocation9 + $0x8] sm:$0xff]   ;;  %v922_v3 = vld [vmem:[%s1321_s2] sm:$0xff]   ;;  %v923_v4 = vld [vmem:[#allocation9] sm:$0xff]   ;;  %vm366_vm1 = vcmask 261120   ;;  %vm413_vm2 = vcmask 130048   ;;  %vm411_vm3 = vcmask 125952  }
  0x43   : > { %814 = vmatprep.mubr.msk.bf16.mxu0 %vm1075_vm0, %v1074_v0  ;;  %822 = vmatprep.mubr.msk.bf16.mxu1 %vm1075_vm0, %v1074_v0  ;;  %s328_s3 = scalar_select %p327_p8, %s1060_s24, 1  ;;  %v423_v6 = vld [vmem:[%s287_s25] sm:$0xff]  ;;  %414 = vst.msk [vmem:[#allocation3] sm:$0xff] %vm413_vm2, %v1074_v0  ;;  %vm415_vm4 = vcmask 7168   ;;  %v1077_v25 = vmov -inf   ;;  %vm590_vm5 = vcmask 1043456  }
  0x44   : > { %811 = vmatpush3.bf16.msra.mxu0 %v920_v1  ;;  %819 = vmatpush3.bf16.msra.mxu1 %v921_v2  ;;  %v424_v8 = vpack.c.bf16 %v423_v6, %v423_v6  ;;  %v786_v9 = vld [vmem:[%s1323_s4] ss:$0 sm:$0xff]  ;;  %s1076_s11 = smov 112   ;;  %416 = vst.msk [vmem:[#allocation4] sm:$0xff] %vm415_vm4, %v1077_v25  ;;  %417 = vst.msk [vmem:[#allocation5] sm:$0xff] %vm415_vm4, %v1074_v0  ;;  %v542_v29 = vshrl.u32 %v541_v28, 7 }
  0x45   : > { %s785_s7 = sshll.u32 %s328_s3, 3  ;;  %812 = vmatprep.subr.bf16.mxu0 %v1074_v0  ;;  %820 = vmatprep.subr.bf16.mxu1 %v1074_v0  ;;  %v790_v10 = vld [vmem:[%s1324_s5] ss:$0 sm:$0xff]  ;;  %v546_v30 = vand.u32 127, %v541_v28  ;;  %vm552_vm7 = vcmask 64512   ;;  %v1078_v37 = vmov 0  }
  0x46   : > { %s333_s16 = scalar_lea.vmem %s1319_s0, %s785_s7  ;;  %918 = vset.pattern.permute.xlu0 %v1078_v37  ;;  %919 = vset.pattern.permute.xlu1 %v1078_v37  ;;  %s797_s25 = sshll.u32 %s1060_s24, 7 }
  0x47   : > { %v341_v5 = vld [vmem:[%s333_s16] sm:$0xff]  ;;  %vm549_vm6 = vcmp.ge.s32.totalorder %v542_v29, %v546_v30  ;;  %s326_s3 = scalar_lea.vmem [#allocation11], %s782_s10  ;;  %s664_s29 = scalar_lea.hbm %s1325_s6, %s797_s25 }
  0x48   : > { %v342_v7 = vpack.c.bf16 %v341_v5, %v341_v5  ;;  %813 = vmatpush3.bf16.msra.mxu0 %v922_v3  ;;  %821 = vmatpush3.bf16.msra.mxu1 %v923_v4  ;;  %s666_s7 = sshll.u32 %s326_s3, 4  ;;  %s652_s15 = scalar_lea.sflag [#allocation8], %s1230_s20  ;;  %s667_s7 = int_to_ptr.vmem [resolvable:$true] %s666_s7 }
  0x49   : > { %826 = vmatprep.subr.bf16.mxu0 %v1074_v0  ;;  %832 = vmatprep.subr.bf16.mxu1 %v1074_v0  ;;  %s984_s16 = scalar_lea.vmem %s667_s7, 128  ;;  %s1079_s24 = smov [#allocation11]  }
  0x4a   : > { %v576_v56 = vld [vmem:[#allocation3] sm:$0xff]  ;;  %p985_p1 = scmp.ne.s32.totalorder %s667_s7, %s984_s16  ;;  %s988_s17 = sshll.u32 %s1079_s24, 4  ;;  %s989_s17 = int_to_ptr.vmem [resolvable:$false] %s988_s17 }
  0x4b   : > { %815 = vmatmul.mubr.msk.bf16.vlgmr.msra.gmra.mxu0 %vm366_vm1, %v342_v7  ;;  %823 = vmatmul.mubr.msk.bf16.vlgmr.msra.gmra.mxu1 %vm366_vm1, %v424_v8  ;;  %v551_v38 = vld [vmem:[#allocation4] sm:$0xff]  ;;  %v568_v50 = vld [vmem:[#allocation5] sm:$0xff]  ;;  %s990_s10 = scalar_lea.vmem %s989_s17, 256  ;;  %p991_p2 = scmp.lt.s32.totalorder %s667_s7, %s989_s17 }
  0x4c   : > { %828 = vmatprep.mubr.msk.bf16.mxu0 %vm1075_vm0, %v1074_v0  ;;  %834 = vmatprep.mubr.msk.bf16.mxu1 %vm1075_vm0, %v1074_v0  ;;  %p986_p10 = pnand %p985_p1, %p1202_p13  ;;  %p992_p3 = scmp.lt.s32.totalorder %s990_s10, %s984_s16 }
  0x4e   : > { %p987_p0 = pneg %p986_p10  ;;  %p993_p5 = por %p992_p3, %p991_p2 }
  0x50   : > { %p994_p7 = pnand %p993_p5, %p987_p0 }
 0x10b   : > { %v404_v11 = vpop.f32.mrf.mxu0  ;;  %v486_v13 = vpop.f32.mrf.mxu1 }
 0x10c   : > { %v405_v12 = vadd.f32 %v786_v9, %v404_v11  ;;  %v487_v14 = vadd.f32 %v790_v10, %v486_v13 }
 0x10d   : > { %v816_v15 = vpop.f32.mrf.mxu0  ;;  %v824_v17 = vpop.f32.mrf.mxu1 }
 0x10e   : > { %v410_v16 = vpack.c.bf16 %v405_v12, %v405_v12  ;;  %v492_v18 = vpack.c.bf16 %v487_v14, %v487_v14 }
 0x10f   : > { %v407_v19 = vpop.f32.mrf.mxu0  ;;  %v489_v20 = vpop.f32.mrf.mxu1 }
 0x110   : > { %412 = vst.msk [vmem:[#allocation2] sm:$0xf] %vm411_vm3, %v410_v16  ;;  %v499_v21 = vsel %vm413_vm2, %v492_v18, 0  ;;  %585 = vrot.lane.b32.xlu1 %v492_v18, %s1076_s11 }
 0x111   : > { %v817_v22 = vpop.f32.mrf.mxu0  ;;  %v825_v23 = vpop.f32.mrf.mxu1  ;;  %827 = vmatpush3.bf16.xpose.msra.mxu0 %v499_v21 }
 0x117   : > { %v493_v24 = vld [vmem:[#allocation2] sm:$0xf] }
 0x118   : > { %829 = vmatmul.mubr.msk.bf16.vlgmr.msra.gmra.mxu0 %vm413_vm2, %v493_v24 }
 0x182   : > { %v586_v26 = vpop.permute.xlu1 %585 }
 0x183   : > { %v592_v27 = vsel %vm590_vm5, %v586_v26, 0 }
 0x184   : > { %833 = vmatpush3.bf16.msra.mxu1 %v592_v27 }
 0x1d8   : > { %v535_v31 = vpop.f32.mrf.mxu0 }
 0x1d9   : > { %v550_v32 = vsel %vm549_vm6, %v535_v31, -inf }
 0x1da   : > { %v830_v33 = vpop.f32.mrf.mxu0  ;;  %v553_v34 = vsel %vm552_vm7, %v550_v32, -inf }
 0x1db   : > { %554 = vmax.xlane.f32.xlu0 %v553_v34 }
 0x1dc   : > { %v538_v35 = vpop.f32.mrf.mxu0 }
 0x1de   : > { %v831_v36 = vpop.f32.mrf.mxu0 }
 0x264   : > { %v555_v39 = vpop.xlane.xlu0 %554 }
 0x265   : > { %v556_v40 = vmax.f32 %v551_v38, %v555_v39 }
 0x267   : > { %v557_v41 = vsub.f32 %v551_v38, %v556_v40  ;;  %636 = vst.msk [vmem:[#allocation4] sm:$0xff] %vm415_vm4, %v556_v40  ;;  %562 = vperm.xlu0 %918, %v556_v40  }
 0x269   : > { %v558_v46 = vmul.f32 1.442695, %v557_v41 }
 0x2e2   : > { %v563_v42 = vpop.permute.xlu0 %562 }
 0x2e3   : > { %v565_v43 = vsub.f32 %v550_v32, %v563_v42 }
 0x2e5   : > { %v566_v44 = vmul.f32 1.442695, %v565_v43 }
 0x2e7   : > { %924 = vpow2.f32 %v566_v44 }
 0x2e8   : > { %926 = vpow2.f32 %v558_v46 }
 0x2f4   : > { %v925_v45 = vpop.eup %924 }
 0x2f5   : > { %v570_v47 = vsel %vm552_vm7, %v925_v45, 0.0  ;;  %v583_v48 = vpack.c.bf16 %v925_v45, %v925_v45  ;;  %v927_v49 = vpop.eup %926 }
 0x2f6   : > { %571 = vadd.xlane.f32.xlu1 %v570_v47  ;;  %v569_v51 = vmul.f32 %v927_v49, %v568_v50 }
 0x2f7   : > { %835 = vmatmul.mubr.msk.bf16.vlgmr.msra.gmra.mxu1 %vm552_vm7, %v583_v48 }
 0x307   : > { %579 = vperm.xlu1 %919, %v927_v49  }
 0x37f   : > { %v572_v52 = vpop.xlane.xlu1 %571 }
 0x380   : > { %v573_v53 = vadd.f32 %v572_v52, %v569_v51 }
 0x382   : > { %575 = vst.msk [vmem:[#allocation5] sm:$0xff] %vm415_vm4, %v573_v53 }
 0x383   : > { %v580_v57 = vpop.permute.xlu1 %579 }
 0x384   : > { %v582_v58 = vmul.f32 %v580_v57, %v576_v56 }
 0x389   : > { %v640_v54 = vld [vmem:[#allocation5] sm:$0xff] }
 0x38a   : > { %928 = vrcp.f32 %v640_v54 }
 0x397   : > { %v929_v55 = vpop.eup %928 }
 0x398   : > { %645 = vperm.xlu0 %918, %v929_v55  }
 0x3b7   : > { %v628_v59 = vpop.f32.mrf.mxu1 }
 0x3b8   : > { %v634_v60 = vadd.f32 %v628_v59, %v582_v58 }
 0x3b9   : > { %v836_v61 = vpop.f32.mrf.mxu1 }
 0x3ba   : > { %635 = vst.msk [vmem:[#allocation3] sm:$0xff] %vm413_vm2, %v634_v60 }
 0x3bb   : > { %v631_v62 = vpop.f32.mrf.mxu1 }
 0x3bd   : > { %v837_v63 = vpop.f32.mrf.mxu1 }
 0x3c1   : > { %v642_v0 = vld [vmem:[#allocation3] sm:$0xff] }
 0x413   : > { %v646_v1 = vpop.permute.xlu0 %645 }
 0x414   : > { %v648_v2 = vmul.f32 %v646_v1, %v642_v0 }
 0x416   : > { %650 = vst.msk [vmem:[%s326_s3] sm:$0xff] %vm413_vm2, %v648_v2 }
 0x417   : > { %997 = shalt.err (!%p994_p7)
}
 0x418   : > { %s998_s18 = scalar_lea.hbm %s664_s29, 128  ;;  %s1002_s28 = scalar_lea.hbm %s1325_s6, 256 }
 0x419   : > { %p999_p6 = scmp.ne.s32.totalorder %s664_s29, %s998_s18  ;;  %p1003_p11 = scmp.lt.s32.totalorder %s664_s29, %s1325_s6 }
 0x41a   : > { %p1004_p12 = scmp.lt.s32.totalorder %s1002_s28, %s998_s18 }
 0x41b   : > { %p1000_p4 = pnand %p999_p6, %p1202_p13 }
 0x41c   : > { %p1005_p8 = por %p1004_p12, %p1003_p11 }
 0x41d   : > { %p1001_p9 = pneg %p1000_p4 }
 0x41f   : > { %p1006_p1 = pnand %p1005_p8, %p1001_p9 }
 0x421   : > { %1009 = shalt.err (!%p1006_p1)
}
 0x422   : > { %844 = dma.vmem_to_hbm [thread:$0]  (%p1202_p13), %s667_s7, 128, %s664_s29, %s652_s15  }
 0x423 PF: > { %s678_s11 = sand.u32 1, %s1048_s21   ;;  %p1343_p10 = scmp.ne.s32.totalorder %s1334_s8, 0 }
 0x424   : > { %p1344_p0 = scmp.ge.s32.totalorder %s1068_s26, 2  ;;  %s679_s25 = scalar_lea.sflag [#allocation8], %s678_s11 }
 0x426   : > { %p855_p2 = pnand %p1344_p0, %p1343_p10 }
 0x428   : > { %p856_p3 = pneg %p855_p2 }
 0x42a   : > { %1043 = dma.done.wait (%p856_p3), %s679_s25, 128  }
 0x42b   : > { %1045 = vsyncadd (%p856_p3), %s679_s25, 4294967168  ;;  %s23_s26 = sadd.s32 1, %s1068_s26   ;;  %s1345_s24 = sld [smem:[#allocation15_spill]] }
 0x42c   : > { %p20_p5 = scmp.ge.s32.totalorder %s23_s26, 4   ;;  %s1346_s25 = sld [smem:[#allocation16_spill]] }
 0x42d   : > { %s1347_s21 = smov %s1052_s22  ;;  %s1348_s22 = smov %s1056_s23 }
 0x42e   : > { %s1349_s23 = smov %s1211_s12  ;;  %22 = sbr.rel (!%p20_p5) target bundleno = 9 (0x9), region = 108 }
 0x433   :  { %684 = vsyncpa [#allocation7], 1 }
 0x434   :  { %686 = vsyncpa [#allocation7 + $0x1], 1 }
 0x435   :  { %687 = vsyncpa [#allocation10], 1 }
 0x436   :  { %688 = vsyncpa [#allocation8], 1 }
 0x437   :  { %690 = vsyncpa [#allocation8 + $0x1], 1 }

</bundles_post_ra>
